<compile_context>
chip_gen: v5e
topology: v5e:2x2
jax: 0.10.0
libtpu: 0.0.40
codegen_flags: <defaults>
</compile_context>

<pallas_src>
import functools
import numpy as np

import jax
import jax.numpy as jnp
from jax.experimental import pallas as pl
from jax.experimental.pallas import tpu as pltpu


# ----------------------------------------------------------------------------
# Small host-side helpers
# ----------------------------------------------------------------------------
def _pick_tile(preferred, total, itemsize):
    """Largest legal tile <= preferred that divides `total` and respects the
    dtype sublane packing (8 rows f32, 16 rows bf16, 32 rows 8-bit)."""
    align = max(8, 32 // max(1, itemsize))
    t = min(preferred, total)
    if total % t == 0 and (t % align == 0 or t == total):
        return t
    return total  # full extent is always a legal block


def positional_encoding_table(S, D):
    pos = np.arange(S, dtype=np.float32).reshape(-1, 1)
    div = np.power(10000.0, np.arange(0, D, 2, dtype=np.float32) / D)
    x = pos / div
    P = np.zeros((S, D), np.float32)
    P[:, 0::2] = np.sin(x)
    P[:, 1::2] = np.cos(x)
    return jnp.asarray(P)


# ----------------------------------------------------------------------------
# In-kernel helpers
# ----------------------------------------------------------------------------
def _layer_norm(x_f32, g_ref, b_ref, eps=1e-5):
    mu = jnp.mean(x_f32, axis=-1, keepdims=True)
    var = jnp.mean(jnp.square(x_f32 - mu), axis=-1, keepdims=True)
    inv = jax.lax.rsqrt(var + eps)
    return (x_f32 - mu) * inv * g_ref[...].astype(jnp.float32) + b_ref[...].astype(jnp.float32)


def _attention(xq, k_ref, v_ref, wq_ref, bq_ref, wo_ref, bo_ref, *,
               n_heads, d_k, kv_chunk, io_dtype):
    """MHA for one query tile against precomputed head-major K/V.

    xq: (Tq, D) io-dtype queries.  k_ref/v_ref: (H, Skv, dk) VMEM refs.
    wq/wo: (D, D), bq/bo: (1, D).  Full-width projections on the MXU with f32
    accumulation; online softmax over KV chunks bounds the f32 scores tensor
    to (H, Tq, kv_chunk).  Returns f32 (Tq, D).
    """
    tq = xq.shape[0]
    skv = k_ref.shape[1]
    inv_sqrt_dk = np.float32(1.0 / np.sqrt(d_k))

    # One full-width (Tq, D) @ (D, D) projection; 1/sqrt(dk) folded into q.
    q2d = (jnp.dot(xq, wq_ref[...], preferred_element_type=jnp.float32)
           + bq_ref[...].astype(jnp.float32)) * inv_sqrt_dk
    q2d = q2d.astype(io_dtype)
    # Split heads with static lane slices (no per-head matmuls).
    q3 = jnp.stack([q2d[:, h * d_k:(h + 1) * d_k] for h in range(n_heads)], axis=0)

    tkv = min(kv_chunk, skv)
    if skv % tkv:
        tkv = skv
    n_chunks = skv // tkv

    m = jnp.full((n_heads, tq, 1), -jnp.inf, jnp.float32)
    l = jnp.zeros((n_heads, tq, 1), jnp.float32)
    acc = jnp.zeros((n_heads, tq, d_k), jnp.float32)
    for c in range(n_chunks):                                   # static unroll
        k3 = k_ref[:, c * tkv:(c + 1) * tkv, :]
        v3 = v_ref[:, c * tkv:(c + 1) * tkv, :]
        s = jnp.einsum('hqd,hkd->hqk', q3, k3, preferred_element_type=jnp.float32)
        m_new = jnp.maximum(m, jnp.max(s, axis=-1, keepdims=True))
        alpha = jnp.exp(m - m_new)
        p = jnp.exp(s - m_new)
        l = alpha * l + jnp.sum(p, axis=-1, keepdims=True)
        acc = alpha * acc + jnp.einsum('hqk,hkd->hqd', p.astype(io_dtype), v3,
                                       preferred_element_type=jnp.float32)
        m = m_new

    ctx = acc / l                                               # exact normalize
    # Merge heads (lane concat) -> one full-width output projection.
    ctx2d = jnp.concatenate([ctx[h] for h in range(n_heads)], axis=-1).astype(io_dtype)
    return (jnp.dot(ctx2d, wo_ref[...], preferred_element_type=jnp.float32)
            + bo_ref[...].astype(jnp.float32))


# ----------------------------------------------------------------------------
# Kernel 1: K/V projection (once per batch per layer, per attention block)
# ----------------------------------------------------------------------------
def kv_project_kernel(*refs, n_heads, d_k, add_pos):
    if add_pos:
        x_ref, pos_ref = refs[0], refs[1]
        rest = refs[2:]
    else:
        x_ref, pos_ref = refs[0], None
        rest = refs[1:]
    wk_ref, bk_ref, wv_ref, bv_ref, k_out_ref, v_out_ref = rest

    io = x_ref.dtype
    x = x_ref[...]                                              # (T, D)
    if add_pos:
        x = (x.astype(jnp.float32) + pos_ref[...].astype(jnp.float32)).astype(io)

    k2d = jnp.dot(x, wk_ref[...], preferred_element_type=jnp.float32) \
        + bk_ref[...].astype(jnp.float32)
    v2d = jnp.dot(x, wv_ref[...], preferred_element_type=jnp.float32) \
        + bv_ref[...].astype(jnp.float32)
    for h in range(n_heads):                                    # head-major store
        k_out_ref[h, :, :] = k2d[:, h * d_k:(h + 1) * d_k].astype(k_out_ref.dtype)
        v_out_ref[h, :, :] = v2d[:, h * d_k:(h + 1) * d_k].astype(v_out_ref.dtype)


def project_kv(x, wk, bk, wv, bv, *, n_heads, kv_tile=256, pos=None):
    """Project x (B, S, D) once into head-major K, V of shape (B, H, S, dk)."""
    B, S, D = x.shape
    dk = D // n_heads
    T = _pick_tile(kv_tile, S, x.dtype.itemsize)
    add_pos = pos is not None
    grid = (B, S // T)
    kernel = functools.partial(kv_project_kernel, n_heads=n_heads, d_k=dk, add_pos=add_pos)

    wspec = pl.BlockSpec(memory_space=pltpu.MemorySpace.VMEM)
    in_specs = [pl.BlockSpec((None, T, D), lambda b, s: (b, s, 0))]
    args = [x]
    if add_pos:
        in_specs.append(pl.BlockSpec((T, D), lambda b, s: (s, 0)))
        args.append(pos)
    in_specs += [wspec] * 4
    args += [wk, bk, wv, bv]

    out_shape = (jax.ShapeDtypeStruct((B, n_heads, S, dk), x.dtype),
                 jax.ShapeDtypeStruct((B, n_heads, S, dk), x.dtype))
    out_specs = (pl.BlockSpec((None, n_heads, T, dk), lambda b, s: (b, 0, s, 0)),
                 pl.BlockSpec((None, n_heads, T, dk), lambda b, s: (b, 0, s, 0)))

    itemsize = x.dtype.itemsize
    flops = 2 * 2 * B * S * D * D                               # K and V projections
    weight_bytes = sum(int(np.prod(w.shape)) * w.dtype.itemsize for w in (wk, bk, wv, bv))
    bytes_accessed = itemsize * 3 * B * S * D + weight_bytes
    est_vmem = weight_bytes + 10 * itemsize * T * D + 8 * T * D
    vmem_limit = int(min(max(3 * est_vmem, 24 * 2**20), 96 * 2**20))

    return pl.pallas_call(
        kernel,
        out_shape=out_shape,
        grid=grid,
        in_specs=in_specs,
        out_specs=out_specs,
        compiler_params=pltpu.CompilerParams(
            dimension_semantics=("parallel", "parallel"),
            vmem_limit_bytes=vmem_limit,
        ),
        cost_estimate=pl.CostEstimate(flops=int(flops), transcendentals=0,
                                      bytes_accessed=int(bytes_accessed)),
    )(*args)


# ----------------------------------------------------------------------------
# Kernel 2: fused DecoderLayer body (per batch, per query tile)
# ----------------------------------------------------------------------------
def decoder_layer_kernel(*refs, n_heads, d_k, kv_chunk, add_pos):
    if add_pos:
        x_ref, pos_ref = refs[0], refs[1]
        rest = refs[2:]
    else:
        x_ref, pos_ref = refs[0], None
        rest = refs[1:]
    (ks_ref, vs_ref, kc_ref, vc_ref,
     sa_wq, sa_bq, sa_wo, sa_bo,
     ca_wq, ca_bq, ca_wo, ca_bo,
     w1_ref, b1_ref, w2_ref, b2_ref,
     g1_ref, be1_ref, g2_ref, be2_ref, g3_ref, be3_ref,
     out_ref) = rest

    io = x_ref.dtype
    x = x_ref[...]                                              # (TQ, D)
    if add_pos:                                                 # fused pos-encoding (layer 0)
        x = (x.astype(jnp.float32) + pos_ref[...].astype(jnp.float32)).astype(io)

    # ---- decoder self-attention + residual + LayerNorm1 -------------------
    sa = _attention(x, ks_ref, vs_ref, sa_wq, sa_bq, sa_wo, sa_bo,
                    n_heads=n_heads, d_k=d_k, kv_chunk=kv_chunk, io_dtype=io)
    out1 = _layer_norm(x.astype(jnp.float32) + sa, g1_ref, be1_ref)
    out1_c = out1.astype(io)

    # ---- encoder-decoder cross-attention + residual + LayerNorm2 ----------
    ca = _attention(out1_c, kc_ref, vc_ref, ca_wq, ca_bq, ca_wo, ca_bo,
                    n_heads=n_heads, d_k=d_k, kv_chunk=kv_chunk, io_dtype=io)
    out2 = _layer_norm(out1 + ca, g2_ref, be2_ref)
    out2_c = out2.astype(io)

    # ---- position-wise FFN (D -> 4D -> D, ReLU) + residual + LayerNorm3 ----
    h1 = jnp.dot(out2_c, w1_ref[...], preferred_element_type=jnp.float32) \
        + b1_ref[...].astype(jnp.float32)
    h1 = jnp.maximum(h1, 0.0).astype(io)
    ffn = jnp.dot(h1, w2_ref[...], preferred_element_type=jnp.float32) \
        + b2_ref[...].astype(jnp.float32)
    out3 = _layer_norm(out2 + ffn, g3_ref, be3_ref)

    out_ref[...] = out3.astype(out_ref.dtype)


def decoder_layer(x, enc, p, *, n_heads, q_block=256, kv_chunk=512, kv_tile=256, pos=None):
    """One DecoderLayer forward.  x: (B, S, D), enc: (B, Se, D)."""
    B, S, D = x.shape
    Se = enc.shape[1]
    assert D % n_heads == 0
    dk = D // n_heads

    # Phase 1: K/V projected once per (batch, layer) -> no per-q-tile recompute.
    k_self, v_self = project_kv(x, p["sa_wk"], p["sa_bk"], p["sa_wv"], p["sa_bv"],
                                n_heads=n_heads, kv_tile=kv_tile, pos=pos)
    k_cross, v_cross = project_kv(enc, p["ca_wk"], p["ca_bk"], p["ca_wv"], p["ca_bv"],
                                  n_heads=n_heads, kv_tile=kv_tile, pos=None)

    TQ = _pick_tile(q_block, S, x.dtype.itemsize)
    add_pos = pos is not None
    grid = (B, S // TQ)
    kernel = functools.partial(decoder_layer_kernel, n_heads=n_heads, d_k=dk,
                               kv_chunk=kv_chunk, add_pos=add_pos)

    wspec = pl.BlockSpec(memory_space=pltpu.MemorySpace.VMEM)
    in_specs = [pl.BlockSpec((None, TQ, D), lambda b, q: (b, q, 0))]
    args = [x]
    if add_pos:
        in_specs.append(pl.BlockSpec((TQ, D), lambda b, q: (q, 0)))
        args.append(pos)
    in_specs += [
        pl.BlockSpec((None, n_heads, S, dk), lambda b, q: (b, 0, 0, 0)),
        pl.BlockSpec((None, n_heads, S, dk), lambda b, q: (b, 0, 0, 0)),
        pl.BlockSpec((None, n_heads, Se, dk), lambda b, q: (b, 0, 0, 0)),
        pl.BlockSpec((None, n_heads, Se, dk), lambda b, q: (b, 0, 0, 0)),
    ]
    args += [k_self, v_self, k_cross, v_cross]

    weights = [p["sa_wq"], p["sa_bq"], p["sa_wo"], p["sa_bo"],
               p["ca_wq"], p["ca_bq"], p["ca_wo"], p["ca_bo"],
               p["w1"], p["b1"], p["w2"], p["b2"],
               p["g1"], p["beta1"], p["g2"], p["beta2"], p["g3"], p["beta3"]]
    in_specs += [wspec] * len(weights)
    args += weights

    # Cost estimate matching the work this call actually executes
    # (K/V projections are counted in project_kv, not here).
    itemsize = x.dtype.itemsize
    flops = B * (
        4 * 2 * S * D * D            # self+cross query & output projections
        + 2 * 2 * S * S * D          # self-attn scores + context
        + 2 * 2 * S * Se * D         # cross-attn scores + context
        + 2 * 2 * S * D * 4 * D      # FFN
    )
    transcendentals = B * n_heads * S * (S + Se)
    weight_bytes = sum(int(np.prod(w.shape)) * w.dtype.itemsize for w in weights)
    kv_bytes = itemsize * B * (2 * S + 2 * Se) * D
    bytes_accessed = itemsize * 2 * B * S * D + kv_bytes + weight_bytes

    # VMEM budget from the actual working set, with headroom.
    tkv = min(kv_chunk, max(S, Se))
    est_vmem = (weight_bytes
                + 2 * itemsize * (2 * S + 2 * Se) * D            # double-buffered K/V blocks
                + 6 * itemsize * TQ * D                          # x / pos / out tiles
                + 4 * (2 * n_heads * TQ * tkv                    # f32 scores / p
                       + 4 * n_heads * TQ * dk                   # f32 acc / ctx
                       + TQ * 4 * D + 4 * TQ * D))               # FFN hidden + residuals
    vmem_limit = int(min(max(3 * est_vmem, 24 * 2**20), 96 * 2**20))

    return pl.pallas_call(
        kernel,
        out_shape=jax.ShapeDtypeStruct((B, S, D), x.dtype),
        grid=grid,
        in_specs=in_specs,
        out_specs=pl.BlockSpec((None, TQ, D), lambda b, q: (b, q, 0)),
        compiler_params=pltpu.CompilerParams(
            dimension_semantics=("parallel", "parallel"),
            vmem_limit_bytes=vmem_limit,
        ),
        cost_estimate=pl.CostEstimate(flops=int(flops),
                                      transcendentals=int(transcendentals),
                                      bytes_accessed=int(bytes_accessed)),
    )(*args)


def decoder_forward(dec_inputs, enc_outputs, layer_params, *, n_heads,
                    q_block=256, kv_chunk=512, kv_tile=256):
    """Decoder.forward: positional encoding (fused into layer 0) + N layers."""
    B, S, D = dec_inputs.shape
    pos = positional_encoding_table(S, D).astype(dec_inputs.dtype)
    x = dec_inputs
    for li, p in enumerate(layer_params):
        x = decoder_layer(x, enc_outputs, p, n_heads=n_heads, q_block=q_block,
                          kv_chunk=kv_chunk, kv_tile=kv_tile,
                          pos=pos if li == 0 else None)
    return x


# ----------------------------------------------------------------------------
# Parameter construction (canonical nn.Linear-like layout) + kernel packing
# ----------------------------------------------------------------------------
def _linear_init(key, fan_in, shape):
    bound = 1.0 / np.sqrt(fan_in)
    return jax.random.uniform(key, shape, jnp.float32, -bound, bound)


def make_canonical_layer(key, D):
    keys = iter(jax.random.split(key, 20))
    p = {}
    for pre in ("sa", "ca"):
        for nm in ("q", "k", "v", "o"):
            p[f"{pre}_w{nm}"] = _linear_init(next(keys), D, (D, D))
            p[f"{pre}_b{nm}"] = _linear_init(next(keys), D, (D,))
    p["w1"] = _linear_init(next(keys), D, (D, 4 * D))
    p["b1"] = _linear_init(next(keys), D, (4 * D,))
    p["w2"] = _linear_init(next(keys), 4 * D, (4 * D, D))
    p["b2"] = _linear_init(next(keys), 4 * D, (D,))
    for i in (1, 2, 3):
        p[f"g{i}"] = jnp.ones((D,), jnp.float32)
        p[f"beta{i}"] = jnp.zeros((D,), jnp.float32)
    return p


def pack_layer(p):
    """Kernel layout: canonical (D, D)/(D, 4D) weights, biases/LN as (1, X) rows."""
    row = lambda b: b.reshape(1, -1)
    out = {}
    for pre in ("sa", "ca"):
        for nm in ("q", "k", "v", "o"):
            out[f"{pre}_w{nm}"] = p[f"{pre}_w{nm}"]
            out[f"{pre}_b{nm}"] = row(p[f"{pre}_b{nm}"])
    out["w1"], out["b1"] = p["w1"], row(p["b1"])
    out["w2"], out["b2"] = p["w2"], row(p["b2"])
    for i in (1, 2, 3):
        out[f"g{i}"] = row(p[f"g{i}"])
        out[f"beta{i}"] = row(p[f"beta{i}"])
    return out


# ----------------------------------------------------------------------------
# Pure-JAX reference (same math as the PyTorch module)
# ----------------------------------------------------------------------------
def _ln_ref(x, g, b, eps=1e-5):
    mu = jnp.mean(x, -1, keepdims=True)
    var = jnp.mean((x - mu) ** 2, -1, keepdims=True)
    return (x - mu) / jnp.sqrt(var + eps) * g + b


def _mha_ref(xq, xkv, wq, bq, wk, bk, wv, bv, wo, bo, H):
    B, Sq, D = xq.shape
    Skv = xkv.shape[1]
    dk = D // H
    q = (xq @ wq + bq).reshape(B, Sq, H, dk).transpose(0, 2, 1, 3)
    k = (xkv @ wk + bk).reshape(B, Skv, H, dk).transpose(0, 2, 1, 3)
    v = (xkv @ wv + bv).reshape(B, Skv, H, dk).transpose(0, 2, 1, 3)
    s = jnp.einsum("bhqd,bhkd->bhqk", q, k) / np.sqrt(dk)
    a = jax.nn.softmax(s, -1)
    ctx = jnp.einsum("bhqk,bhkd->bhqd", a, v).transpose(0, 2, 1, 3).reshape(B, Sq, D)
    return ctx @ wo + bo


def decoder_reference(dec_inputs, enc_outputs, canon_layers, H):
    B, S, D = dec_inputs.shape
    x = dec_inputs + positional_encoding_table(S, D)[None]
    for p in canon_layers:
        sa = _mha_ref(x, x, p["sa_wq"], p["sa_bq"], p["sa_wk"], p["sa_bk"],
                      p["sa_wv"], p["sa_bv"], p["sa_wo"], p["sa_bo"], H)
        out1 = _ln_ref(x + sa, p["g1"], p["beta1"])
        ca = _mha_ref(out1, enc_outputs, p["ca_wq"], p["ca_bq"], p["ca_wk"], p["ca_bk"],
                      p["ca_wv"], p["ca_bv"], p["ca_wo"], p["ca_bo"], H)
        out2 = _ln_ref(out1 + ca, p["g2"], p["beta2"])
        ffn = jnp.maximum(out2 @ p["w1"] + p["b1"], 0.0) @ p["w2"] + p["b2"]
        x = _ln_ref(out2 + ffn, p["g3"], p["beta3"])
    return x


# ----------------------------------------------------------------------------
# Demo
# ----------------------------------------------------------------------------
if __name__ == "__main__":
    B, S_DEC, S_ENC, D, H, L = 2, 16, 16, 128, 4, 2   # small, lane-dense shapes

    key = jax.random.PRNGKey(0)
    k_dec, k_enc, k_params = jax.random.split(key, 3)
    dec_inputs = jax.random.normal(k_dec, (B, S_DEC, D), jnp.float32)
    enc_outputs = jax.random.normal(k_enc, (B, S_ENC, D), jnp.float32)

    canon_layers = [make_canonical_layer(k, D) for k in jax.random.split(k_params, L)]
    packed_layers = [pack_layer(p) for p in canon_layers]

    # f32 run (TQ=8 is sublane-aligned for f32, 2 query tiles per batch elem).
    out = decoder_forward(dec_inputs, enc_outputs, packed_layers,
                          n_heads=H, q_block=8, kv_chunk=512, kv_tile=256)
    out = jax.block_until_ready(out)
    ref = jax.block_until_ready(decoder_reference(dec_inputs, enc_outputs, canon_layers, H))
    # Tolerance covers the MXU's default (bf16-pass) f32 matmul precision.
    np.testing.assert_allclose(np.asarray(out), np.asarray(ref), rtol=2e-2, atol=2e-2)

    # bf16 smoke run: TQ=16 matches bf16 sublane packing; f32 accumulation inside.
    dec_bf = dec_inputs.astype(jnp.bfloat16)
    enc_bf = enc_outputs.astype(jnp.bfloat16)
    packed_bf = [{k: v.astype(jnp.bfloat16) for k, v in lp.items()} for lp in packed_layers]
    out_bf = jax.block_until_ready(
        decoder_forward(dec_bf, enc_bf, packed_bf, n_heads=H,
                        q_block=16, kv_chunk=512, kv_tile=256))
    assert out_bf.shape == ref.shape
    assert bool(jnp.all(jnp.isfinite(out_bf.astype(jnp.float32))))

    print("KERNEL_OK")
</pallas_src>

<mosaic_0001>
module attributes {stable_mosaic.version = 11 : i64} {
  func.func @kv_project_kernel(%arg0: i32, %arg1: i32, %arg2: memref<1x16x128xf32, #tpu.memory_space<vmem>>, %arg3: memref<16x128xf32, #tpu.memory_space<vmem>>, %arg4: memref<128x128xf32, #tpu.memory_space<vmem>>, %arg5: memref<1x128xf32, #tpu.memory_space<vmem>>, %arg6: memref<128x128xf32, #tpu.memory_space<vmem>>, %arg7: memref<1x128xf32, #tpu.memory_space<vmem>>, %arg8: memref<1x4x16x32xf32, #tpu.memory_space<vmem>>, %arg9: memref<1x4x16x32xf32, #tpu.memory_space<vmem>>) attributes {dimension_semantics = [#tpu.dimension_semantics<parallel>, #tpu.dimension_semantics<parallel>], iteration_bounds = array<i64: 2, 1>, scalar_prefetch = 0 : i64, scratch_operands = 0 : i64, tpu.core_type = #tpu.core_type<tc>, window_params = [{transform_indices = @transform_0, window_bounds = array<i64: 1, 16, 128>}, {transform_indices = @transform_1, window_bounds = array<i64: 16, 128>}, {pipeline_mode = #tpu.pipeline_mode<synchronous>, transform_indices = @transform_2, window_bounds = array<i64: 128, 128>}, {pipeline_mode = #tpu.pipeline_mode<synchronous>, transform_indices = @transform_3, window_bounds = array<i64: 1, 128>}, {pipeline_mode = #tpu.pipeline_mode<synchronous>, transform_indices = @transform_4, window_bounds = array<i64: 128, 128>}, {pipeline_mode = #tpu.pipeline_mode<synchronous>, transform_indices = @transform_5, window_bounds = array<i64: 1, 128>}, {transform_indices = @transform_6, window_bounds = array<i64: 1, 4, 16, 32>}, {transform_indices = @transform_7, window_bounds = array<i64: 1, 4, 16, 32>}]} {
    %c0 = arith.constant 0 : index
    %c0_0 = arith.constant 0 : index
    %c0_1 = arith.constant 0 : index
    %0 = vector.load %arg2[%c0, %c0_0, %c0_1] : memref<1x16x128xf32, #tpu.memory_space<vmem>>, vector<1x16x128xf32>
    %1 = vector.shape_cast %0 : vector<1x16x128xf32> to vector<16x128xf32>
    %c0_2 = arith.constant 0 : index
    %c0_3 = arith.constant 0 : index
    %2 = vector.load %arg3[%c0_2, %c0_3] : memref<16x128xf32, #tpu.memory_space<vmem>>, vector<16x128xf32>
    %3 = arith.addf %1, %2 : vector<16x128xf32>
    %c0_4 = arith.constant 0 : index
    %c0_5 = arith.constant 0 : index
    %4 = vector.load %arg4[%c0_4, %c0_5] : memref<128x128xf32, #tpu.memory_space<vmem>>, vector<128x128xf32>
    %cst = arith.constant dense<0.000000e+00> : vector<16x128xf32>
    %5 = tpu.matmul %3, %4, %cst {dimension_numbers = #tpu.dot_dimension_numbers<[1], [0], [0], [1], [0, 0, 1, 1], [], []>} : vector<16x128xf32>, vector<128x128xf32>, vector<16x128xf32> -> vector<16x128xf32>
    %c0_6 = arith.constant 0 : index
    %c0_7 = arith.constant 0 : index
    %6 = vector.load %arg5[%c0_6, %c0_7] : memref<1x128xf32, #tpu.memory_space<vmem>>, vector<1x128xf32>
    %7 = vector.broadcast %6 : vector<1x128xf32> to vector<16x128xf32>
    %8 = arith.addf %5, %7 : vector<16x128xf32>
    %c0_8 = arith.constant 0 : index
    %c0_9 = arith.constant 0 : index
    %9 = vector.load %arg6[%c0_8, %c0_9] : memref<128x128xf32, #tpu.memory_space<vmem>>, vector<128x128xf32>
    %cst_10 = arith.constant dense<0.000000e+00> : vector<16x128xf32>
    %10 = tpu.matmul %3, %9, %cst_10 {dimension_numbers = #tpu.dot_dimension_numbers<[1], [0], [0], [1], [0, 0, 1, 1], [], []>} : vector<16x128xf32>, vector<128x128xf32>, vector<16x128xf32> -> vector<16x128xf32>
    %c0_11 = arith.constant 0 : index
    %c0_12 = arith.constant 0 : index
    %11 = vector.load %arg7[%c0_11, %c0_12] : memref<1x128xf32, #tpu.memory_space<vmem>>, vector<1x128xf32>
    %12 = vector.broadcast %11 : vector<1x128xf32> to vector<16x128xf32>
    %13 = arith.addf %10, %12 : vector<16x128xf32>
    %14 = vector.extract_strided_slice %8 {offsets = [0, 0], sizes = [16, 32], strides = [1, 1]} : vector<16x128xf32> to vector<16x32xf32>
    %c0_13 = arith.constant 0 : index
    %c0_14 = arith.constant 0 : index
    %c0_15 = arith.constant 0 : index
    %c0_16 = arith.constant 0 : index
    %15 = vector.load %arg8[%c0_13, %c0_14, %c0_15, %c0_16] : memref<1x4x16x32xf32, #tpu.memory_space<vmem>>, vector<1x1x16x32xf32>
    %16 = vector.shape_cast %15 : vector<1x1x16x32xf32> to vector<16x32xf32>
    %17 = vector.shape_cast %14 : vector<16x32xf32> to vector<1x1x16x32xf32>
    tpu.vector_store %arg8[%c0_13, %c0_14, %c0_15, %c0_16], %17 {strides = array<i32>} : memref<1x4x16x32xf32, #tpu.memory_space<vmem>>, vector<1x1x16x32xf32>,
    %18 = vector.extract_strided_slice %13 {offsets = [0, 0], sizes = [16, 32], strides = [1, 1]} : vector<16x128xf32> to vector<16x32xf32>
    %c0_17 = arith.constant 0 : index
    %c0_18 = arith.constant 0 : index
    %c0_19 = arith.constant 0 : index
    %c0_20 = arith.constant 0 : index
    %19 = vector.load %arg9[%c0_17, %c0_18, %c0_19, %c0_20] : memref<1x4x16x32xf32, #tpu.memory_space<vmem>>, vector<1x1x16x32xf32>
    %20 = vector.shape_cast %19 : vector<1x1x16x32xf32> to vector<16x32xf32>
    %21 = vector.shape_cast %18 : vector<16x32xf32> to vector<1x1x16x32xf32>
    tpu.vector_store %arg9[%c0_17, %c0_18, %c0_19, %c0_20], %21 {strides = array<i32>} : memref<1x4x16x32xf32, #tpu.memory_space<vmem>>, vector<1x1x16x32xf32>,
    %22 = vector.extract_strided_slice %8 {offsets = [0, 32], sizes = [16, 32], strides = [1, 1]} : vector<16x128xf32> to vector<16x32xf32>
    %c0_21 = arith.constant 0 : index
    %c1 = arith.constant 1 : index
    %c0_22 = arith.constant 0 : index
    %c0_23 = arith.constant 0 : index
    %23 = vector.load %arg8[%c0_21, %c1, %c0_22, %c0_23] : memref<1x4x16x32xf32, #tpu.memory_space<vmem>>, vector<1x1x16x32xf32>
    %24 = vector.shape_cast %23 : vector<1x1x16x32xf32> to vector<16x32xf32>
    %25 = vector.shape_cast %22 : vector<16x32xf32> to vector<1x1x16x32xf32>
    tpu.vector_store %arg8[%c0_21, %c1, %c0_22, %c0_23], %25 {strides = array<i32>} : memref<1x4x16x32xf32, #tpu.memory_space<vmem>>, vector<1x1x16x32xf32>,
    %26 = vector.extract_strided_slice %13 {offsets = [0, 32], sizes = [16, 32], strides = [1, 1]} : vector<16x128xf32> to vector<16x32xf32>
    %c0_24 = arith.constant 0 : index
    %c1_25 = arith.constant 1 : index
    %c0_26 = arith.constant 0 : index
    %c0_27 = arith.constant 0 : index
    %27 = vector.load %arg9[%c0_24, %c1_25, %c0_26, %c0_27] : memref<1x4x16x32xf32, #tpu.memory_space<vmem>>, vector<1x1x16x32xf32>
    %28 = vector.shape_cast %27 : vector<1x1x16x32xf32> to vector<16x32xf32>
    %29 = vector.shape_cast %26 : vector<16x32xf32> to vector<1x1x16x32xf32>
    tpu.vector_store %arg9[%c0_24, %c1_25, %c0_26, %c0_27], %29 {strides = array<i32>} : memref<1x4x16x32xf32, #tpu.memory_space<vmem>>, vector<1x1x16x32xf32>,
    %30 = vector.extract_strided_slice %8 {offsets = [0, 64], sizes = [16, 32], strides = [1, 1]} : vector<16x128xf32> to vector<16x32xf32>
    %c0_28 = arith.constant 0 : index
    %c2 = arith.constant 2 : index
    %c0_29 = arith.constant 0 : index
    %c0_30 = arith.constant 0 : index
    %31 = vector.load %arg8[%c0_28, %c2, %c0_29, %c0_30] : memref<1x4x16x32xf32, #tpu.memory_space<vmem>>, vector<1x1x16x32xf32>
    %32 = vector.shape_cast %31 : vector<1x1x16x32xf32> to vector<16x32xf32>
    %33 = vector.shape_cast %30 : vector<16x32xf32> to vector<1x1x16x32xf32>
    tpu.vector_store %arg8[%c0_28, %c2, %c0_29, %c0_30], %33 {strides = array<i32>} : memref<1x4x16x32xf32, #tpu.memory_space<vmem>>, vector<1x1x16x32xf32>,
    %34 = vector.extract_strided_slice %13 {offsets = [0, 64], sizes = [16, 32], strides = [1, 1]} : vector<16x128xf32> to vector<16x32xf32>
    %c0_31 = arith.constant 0 : index
    %c2_32 = arith.constant 2 : index
    %c0_33 = arith.constant 0 : index
    %c0_34 = arith.constant 0 : index
    %35 = vector.load %arg9[%c0_31, %c2_32, %c0_33, %c0_34] : memref<1x4x16x32xf32, #tpu.memory_space<vmem>>, vector<1x1x16x32xf32>
    %36 = vector.shape_cast %35 : vector<1x1x16x32xf32> to vector<16x32xf32>
    %37 = vector.shape_cast %34 : vector<16x32xf32> to vector<1x1x16x32xf32>
    tpu.vector_store %arg9[%c0_31, %c2_32, %c0_33, %c0_34], %37 {strides = array<i32>} : memref<1x4x16x32xf32, #tpu.memory_space<vmem>>, vector<1x1x16x32xf32>,
    %38 = vector.extract_strided_slice %8 {offsets = [0, 96], sizes = [16, 32], strides = [1, 1]} : vector<16x128xf32> to vector<16x32xf32>
    %c0_35 = arith.constant 0 : index
    %c3 = arith.constant 3 : index
    %c0_36 = arith.constant 0 : index
    %c0_37 = arith.constant 0 : index
    %39 = vector.load %arg8[%c0_35, %c3, %c0_36, %c0_37] : memref<1x4x16x32xf32, #tpu.memory_space<vmem>>, vector<1x1x16x32xf32>
    %40 = vector.shape_cast %39 : vector<1x1x16x32xf32> to vector<16x32xf32>
    %41 = vector.shape_cast %38 : vector<16x32xf32> to vector<1x1x16x32xf32>
    tpu.vector_store %arg8[%c0_35, %c3, %c0_36, %c0_37], %41 {strides = array<i32>} : memref<1x4x16x32xf32, #tpu.memory_space<vmem>>, vector<1x1x16x32xf32>,
    %42 = vector.extract_strided_slice %13 {offsets = [0, 96], sizes = [16, 32], strides = [1, 1]} : vector<16x128xf32> to vector<16x32xf32>
    %c0_38 = arith.constant 0 : index
    %c3_39 = arith.constant 3 : index
    %c0_40 = arith.constant 0 : index
    %c0_41 = arith.constant 0 : index
    %43 = vector.load %arg9[%c0_38, %c3_39, %c0_40, %c0_41] : memref<1x4x16x32xf32, #tpu.memory_space<vmem>>, vector<1x1x16x32xf32>
    %44 = vector.shape_cast %43 : vector<1x1x16x32xf32> to vector<16x32xf32>
    %45 = vector.shape_cast %42 : vector<16x32xf32> to vector<1x1x16x32xf32>
    tpu.vector_store %arg9[%c0_38, %c3_39, %c0_40, %c0_41], %45 {strides = array<i32>} : memref<1x4x16x32xf32, #tpu.memory_space<vmem>>, vector<1x1x16x32xf32>,
    return
  }
  func.func @transform_0(%arg0: i32, %arg1: i32) -> (i32, i32, i32) {
    %c0_i32 = arith.constant 0 : i32
    %c0_i32_0 = arith.constant 0 : i32
    return %arg0, %arg1, %c0_i32 : i32, i32, i32
  }
  func.func @transform_1(%arg0: i32, %arg1: i32) -> (i32, i32) {
    %c0_i32 = arith.constant 0 : i32
    %c0_i32_0 = arith.constant 0 : i32
    return %arg1, %c0_i32 : i32, i32
  }
  func.func @transform_2(%arg0: i32, %arg1: i32) -> (i32, i32) {
    %c0_i32 = arith.constant 0 : i32
    %c0_i32_0 = arith.constant 0 : i32
    %c0_i32_1 = arith.constant 0 : i32
    return %c0_i32, %c0_i32_0 : i32, i32
  }
  func.func @transform_3(%arg0: i32, %arg1: i32) -> (i32, i32) {
    %c0_i32 = arith.constant 0 : i32
    %c0_i32_0 = arith.constant 0 : i32
    %c0_i32_1 = arith.constant 0 : i32
    return %c0_i32, %c0_i32_0 : i32, i32
  }
  func.func @transform_4(%arg0: i32, %arg1: i32) -> (i32, i32) {
    %c0_i32 = arith.constant 0 : i32
    %c0_i32_0 = arith.constant 0 : i32
    %c0_i32_1 = arith.constant 0 : i32
    return %c0_i32, %c0_i32_0 : i32, i32
  }
  func.func @transform_5(%arg0: i32, %arg1: i32) -> (i32, i32) {
    %c0_i32 = arith.constant 0 : i32
    %c0_i32_0 = arith.constant 0 : i32
    %c0_i32_1 = arith.constant 0 : i32
    return %c0_i32, %c0_i32_0 : i32, i32
  }
  func.func @transform_6(%arg0: i32, %arg1: i32) -> (i32, i32, i32, i32) {
    %c0_i32 = arith.constant 0 : i32
    %c0_i32_0 = arith.constant 0 : i32
    %c0_i32_1 = arith.constant 0 : i32
    return %arg0, %c0_i32, %arg1, %c0_i32_0 : i32, i32, i32, i32
  }
  func.func @transform_7(%arg0: i32, %arg1: i32) -> (i32, i32, i32, i32) {
    %c0_i32 = arith.constant 0 : i32
    %c0_i32_0 = arith.constant 0 : i32
    %c0_i32_1 = arith.constant 0 : i32
    return %arg0, %c0_i32, %arg1, %c0_i32_0 : i32, i32, i32, i32
  }
}

</mosaic_0001>

<bundles_post_ra>
// kernel: tpu_custom_call.1
= control target key start
LH: loop header
LB: loop body
LE: loop exit
PB: predicated region body
PF: predicated region fallthrough
CT: control target
= control target key end

     0   :  { %s1470_s0 = inlined_call_operand.hbm [shape: f32[2,16,128], index: 0, kind: input, shape index: {}]   ;;  %s1471_s1 = inlined_call_operand.hbm [shape: f32[16,128], index: 1, kind: input, shape index: {}]   ;;  %s1472_s2 = inlined_call_operand.hbm [shape: f32[128,128], index: 2, kind: input, shape index: {}]   ;;  %s1473_s3 = inlined_call_operand.vmem [shape: f32[1,128], index: 3, kind: input, shape index: {}]   ;;  %s1474_s4 = inlined_call_operand.hbm [shape: f32[128,128], index: 4, kind: input, shape index: {}]   ;;  %s1475_s5 = inlined_call_operand.vmem [shape: f32[1,128], index: 5, kind: input, shape index: {}]   ;;  %s1476_s6 = inlined_call_operand.hbm [shape: f32[2,4,16,32], index: 6, kind: output, shape index: {0}]   ;;  %s1477_s7 = inlined_call_operand.hbm [shape: f32[2,4,16,32], index: 7, kind: output, shape index: {1}]  }
   0x1   :  { %1483 = sst [smem:[#allocation20_spill]] %s1471_s1 }
   0x2   :  { %1484 = sst [smem:[#allocation21_spill]] %s1472_s2 }
   0x3   :  { %1485 = sst [smem:[#allocation22_spill]] %s1474_s4 }
   0x4   :  { %13 = vsyncpa [#allocation3], 0 }
   0x5   :  { %15 = vsyncpa [#allocation3 + $0x1], 0 }
   0x6   :  { %16 = vsyncpa [#allocation6], 0 }
   0x7   :  { %17 = vsyncpa [#allocation9], 0 }
   0x8   :  { %18 = vsyncpa [#allocation4], 0 }
   0x9   :  { %20 = vsyncpa [#allocation4 + $0x1], 0 }
   0xa   :  { %21 = vsyncpa [#allocation12], 0 }
   0xb   :  { %23 = vsyncpa [#allocation12 + $0x1], 0  ;;  %s1216_s24 = smov 0   ;;  %s1218_s25 = smov 0  }
   0xc   :  { %s1220_s26 = smov 0   ;;  %s1222_s27 = smov 0  }
   0xd   :  { %s1224_s28 = smov 0   ;;  %s1226_s29 = smov 0  }
   0xe LB: > { %1486 = sst [smem:[#allocation18_spill]] %s1164_s29  ;;  %s743_s30 = sadd.s32 4294967295, %s1164_s29   ;;  %s1164_s29 = sphi %s1226_s29, %s29_s29   ;;  %s1160_s28 = sphi %s1224_s28, %s1507_s28   ;;  %s1156_s27 = sphi %s1222_s27, %s1506_s27   ;;  %s1152_s26 = sphi %s1220_s26, %s1505_s26   ;;  %s1148_s25 = sphi %s1218_s25, %s1504_s25   ;;  %s1144_s24 = sphi %s1216_s24, %s1503_s24  }
   0xf   : > { %s744_s8 = sadd.s32 4294967294, %s1164_s29   ;;  %p63_p0 = scmp.ne.s32.totalorder %s1148_s25, %s1144_s24 }
  0x10   : > { %p1250_p1 = scmp.eq.s32.totalorder %s743_s30, 0  ;;  %p1254_p2 = scmp.eq.s32.totalorder %s743_s30, 1 }
  0x11   : > { %p205_p3 = scmp.eq.s32.totalorder %s744_s8, 1  ;;  %p745_p5 = scmp.ge.s32.totalorder %s1164_s29, 1 }
  0x12   : > { %p1260_p4 = por %p1250_p1, %p63_p0  ;;  %p240_p7 = scmp.lt.s32.totalorder %s1164_s29, 3 }
  0x13   : > { %p1265_p6 = por %p205_p3, %p63_p0  ;;  %s1491_s1 = sld [smem:[#allocation20_spill]] }
  0x14   : > { %p1273_p8 = pnand %p745_p5, %p240_p7  ;;  %s1166_s17 = smov [#allocation5]  }
  0x15   : > { %s256_s18 = sshll.u32 %s1166_s17, 4  ;;  %p749_p11 = scmp.ge.s32.totalorder %s1164_s29, 2  ;;  %s257_s18 = int_to_ptr.vmem [resolvable:$true] %s256_s18 }
  0x16   : > { %p833_p9 = pneg %p1273_p8  ;;  %s1494_s2 = sld [smem:[#allocation21_spill]] }
  0x17   : > { %s1478_s23 = smov 128   ;;  %s1479_s30 = smov 8  }
  0x18   : > { %p1281_p10 = pnand %p833_p9, %p1250_p1  ;;  %s1169_s8 = smov [#allocation7]  }
  0x19   : > { %s254_s15 = sshll.u32 %s1491_s1, 4  ;;  %s270_s13 = sshll.u32 %s1169_s8, 4  ;;  %s255_s15 = int_to_ptr.hbm [resolvable:$true] %s254_s15  ;;  %s271_s13 = int_to_ptr.vmem [resolvable:$true] %s270_s13 }
  0x1a   : > { %836 = dma.hbm_to_vmem [thread:$0]  (!%p1281_p10), %s255_s15, 256, %s257_s18, [#allocation6], %s1478_s23, %s1478_s23, %s1479_s30  }
  0x1b   : > { %s1495_s4 = sld [smem:[#allocation22_spill]]  ;;  %s1170_s21 = smov [#allocation8]  }
  0x1c   : > { %s268_s22 = sshll.u32 %s1494_s2, 4  ;;  %s287_s1 = sshll.u32 %s1170_s21, 4  ;;  %s269_s22 = int_to_ptr.hbm [resolvable:$true] %s268_s22  ;;  %s288_s1 = int_to_ptr.vmem [resolvable:$true] %s287_s1 }
  0x1d   : > { %839 = dma.hbm_to_vmem [thread:$0]  (!%p1281_p10), %s269_s22, 2048, %s271_s13, [#allocation6], %s1478_s23, %s1478_s23, %s1479_s30  }
  0x1e   : > { %s41_s15 = sadd.s32 1, %s1160_s28  ;;  %s50_s18 = sadd.s32 1, %s1152_s26 }
  0x1f   : > { %p43_p12 = scmp.ge.s32.totalorder %s41_s15, 2  ;;  %p57_p13 = scmp.ne.s32.totalorder %s1152_s26, %s1148_s25 }
  0x20   : > { %p58_p0 = scmp.eq.s32.totalorder %s1164_s29, 0  ;;  %p857_p7 = scmp.lt.s32.totalorder %s1164_s29, 2 }
  0x21   : > { %s285_s20 = sshll.u32 %s1495_s4, 4  ;;  %s1509_s15 = smov (%p43_p12, %s41_s15), 0  ;;  %s286_s20 = int_to_ptr.hbm [resolvable:$true] %s285_s20 }
  0x22   : > { %842 = dma.hbm_to_vmem [thread:$0]  (!%p1281_p10), %s286_s20, 2048, %s288_s1, [#allocation9], %s1478_s23, %s1478_s23, %s1479_s30  }
  0x23   : > { %1496 = sst [smem:[#allocation19_spill]] %s1509_s15  ;;  %p1314_p3 = por %p58_p0, %p57_p13 }
  0x24   : > { %p1320_p5 = por %p1254_p2, %p57_p13  ;;  %s45_s8 = ssub.s32 %s1160_s28, %s1509_s15 }
  0x25   : > { %p48_p9 = scmp.eq.s32.totalorder %s45_s8, 0  ;;  %s304_s1 = sand.u32 1, %s1152_s26  }
  0x26   : > { %s750_s13 = sshll.u32 %s304_s1, 4  ;;  %s780_s17 = sshll.u32 %s1160_s28, 4 }
  0x27   : > { %s1329_s14 = scalar_select %p48_p9, %s1152_s26, %s50_s18  }
  0x28   : > { %s315_s23 = scalar_lea.hbm %s1470_s0, %s780_s17  ;;  %s308_s30 = scalar_lea.vmem [#allocation2], %s750_s13 }
  0x29   : > { %s318_s2 = sshll.u32 %s308_s30, 4  ;;  %s316_s10 = sshll.u32 %s315_s23, 4  ;;  %s319_s2 = int_to_ptr.vmem [resolvable:$true] %s318_s2  ;;  %s317_s10 = int_to_ptr.hbm [resolvable:$true] %s316_s10 }
  0x2a   : > { %p844_p2 = pnand %p857_p7, %p1314_p3  ;;  %s305_s4 = scalar_lea.sflag [#allocation3], %s304_s1 }
  0x2b   : > { %s1499_s15 = smov 8   ;;  %s1500_s29 = smov 128  }
  0x2c   : > { %846 = dma.hbm_to_vmem [thread:$0]  (!%p844_p2), %s317_s10, 256, %s319_s2, %s305_s4, %s1500_s29, %s1500_s29, %s1499_s15  }
  0x2d   : > { %330 = sbr.rel (%p1273_p8) target bundleno = 371 (0x173), region = 44  ;;  %s1343_s18 = sand.u32 (!%p1273_p8), 1, %s1148_s25  }
  0x2e   : > { %s754_s30 = sshll.u32 (!%p1273_p8), %s1343_s18, 4  ;;  %s333_s23 = scalar_lea.sflag (!%p1273_p8), [#allocation3], %s1343_s18 }
  0x2f   : > { %s1347_s8 = scalar_lea.vmem (!%p1273_p8), [#allocation2], %s754_s30 }
  0x32   : > { %1123 = dma.done.wait (%p1260_p4), %s333_s23, 256  }
  0x33   : > { %1125 = vsyncadd (%p1260_p4), %s333_s23, 4294967040 }
  0x34   : > { %1127 = dma.done.wait (%p1250_p1), [#allocation6], 2304  }
  0x35   : > { %1129 = vsyncadd (%p1250_p1), [#allocation6], 4294964992 }
  0x36   : > { %1131 = dma.done.wait (%p1250_p1), [#allocation9], 2048  }
  0x37   : > { %1133 = vsyncadd (%p1250_p1), [#allocation9], 4294965248  ;;  %v413_v0 = vld [vmem:[#allocation7 + $0x78] sm:$0xff]  ;;  %v412_v2 = vld [vmem:[#allocation7 + $0x70] sm:$0xff]  ;;  %s758_s2 = sshll.u32 %s1343_s18, 6  ;;  %vm484_vm0 = vcmask 261120  }
  0x38   : > { %v456_v1 = vld [vmem:[#allocation8 + $0x78] sm:$0xff]  ;;  %418 = vmatpush.msra.mxu0 %v413_v0  ;;  %v455_v3 = vld [vmem:[#allocation8 + $0x70] sm:$0xff]  ;;  %v411_v4 = vld [vmem:[#allocation7 + $0x68] sm:$0xff]  ;;  %783 = vmatpush.msra.mxu2 %v413_v0  ;;  %s1370_s16 = scalar_lea.vmem [#allocation10], %s758_s2  ;;  %s1171_s15 = smov 96  }
  0x39   : > { %461 = vmatpush.msra.mxu1 %v456_v1  ;;  %799 = vmatpush.msra.mxu3 %v456_v1  ;;  %v454_v5 = vld [vmem:[#allocation8 + $0x68] sm:$0xff]  ;;  %v410_v6 = vld [vmem:[#allocation7 + $0x60] sm:$0xff]  ;;  %v409_v8 = vld [vmem:[#allocation7 + $0x58] sm:$0xff]  ;;  %s1172_s22 = smov 64   ;;  %s1374_s1 = scalar_lea.vmem [#allocation11], %s758_s2 }
  0x3a   : > { %419 = vmatpush.msra.mxu0 %v412_v2  ;;  %v453_v7 = vld [vmem:[#allocation8 + $0x60] sm:$0xff]  ;;  %784 = vmatpush.msra.mxu2 %v412_v2  ;;  %v452_v9 = vld [vmem:[#allocation8 + $0x58] sm:$0xff]  ;;  %v408_v10 = vld [vmem:[#allocation7 + $0x50] sm:$0xff]  ;;  %s1173_s13 = smov 32   ;;  %s781_s17 = sshll.u32 %s1156_s27, 6 }
  0x3b   : > { %462 = vmatpush.msra.mxu1 %v455_v3  ;;  %800 = vmatpush.msra.mxu3 %v455_v3  ;;  %v451_v11 = vld [vmem:[#allocation8 + $0x50] sm:$0xff]  ;;  %v407_v12 = vld [vmem:[#allocation7 + $0x48] sm:$0xff]  ;;  %v406_v14 = vld [vmem:[#allocation7 + $0x40] sm:$0xff]  ;;  %s566_s10 = scalar_lea.hbm %s1476_s6, %s781_s17  ;;  %s567_s30 = sshll.u32 %s1370_s16, 4  ;;  %s1410_s30 = int_to_ptr.vmem [resolvable:$true] %s567_s30 }
  0x3c   : > { %420 = vmatpush.msra.mxu0 %v411_v4  ;;  %785 = vmatpush.msra.mxu2 %v411_v4  ;;  %v450_v13 = vld [vmem:[#allocation8 + $0x48] sm:$0xff]  ;;  %v449_v15 = vld [vmem:[#allocation8 + $0x40] sm:$0xff]  ;;  %v405_v16 = vld [vmem:[#allocation7 + $0x38] sm:$0xff]  ;;  %s585_s2 = scalar_lea.hbm %s1477_s7, %s781_s17  ;;  %s569_s4 = sshll.u32 %s566_s10, 4  ;;  %s570_s4 = int_to_ptr.hbm [resolvable:$true] %s569_s4 }
  0x3d   : > { %463 = vmatpush.msra.mxu1 %v454_v5  ;;  %801 = vmatpush.msra.mxu3 %v454_v5  ;;  %v448_v17 = vld [vmem:[#allocation8 + $0x38] sm:$0xff]  ;;  %v404_v18 = vld [vmem:[#allocation7 + $0x30] sm:$0xff]  ;;  %v403_v20 = vld [vmem:[#allocation7 + $0x28] sm:$0xff]  ;;  %s586_s27 = sshll.u32 %s1374_s1, 4  ;;  %s588_s29 = sshll.u32 %s585_s2, 4  ;;  %s1415_s27 = int_to_ptr.vmem [resolvable:$true] %s586_s27  ;;  %s1417_s29 = int_to_ptr.hbm [resolvable:$true] %s588_s29 }
  0x3e   : > { %421 = vmatpush.msra.mxu0 %v410_v6  ;;  %786 = vmatpush.msra.mxu2 %v410_v6  ;;  %v447_v19 = vld [vmem:[#allocation8 + $0x30] sm:$0xff]  ;;  %v446_v21 = vld [vmem:[#allocation8 + $0x28] sm:$0xff]  ;;  %v402_v22 = vld [vmem:[#allocation7 + $0x20] sm:$0xff]  ;;  %s548_s9 = scalar_lea.sflag [#allocation4], %s1343_s18  ;;  %s1056_s11 = sshra.s32 %s570_s4, 4  ;;  %s1057_s11 = int_to_ptr.hbm [resolvable:$true] %s1056_s11 }
  0x3f   : > { %464 = vmatpush.msra.mxu1 %v453_v7  ;;  %802 = vmatpush.msra.mxu3 %v453_v7  ;;  %v445_v23 = vld [vmem:[#allocation8 + $0x20] sm:$0xff]  ;;  %v401_v24 = vld [vmem:[#allocation7 + $0x18] sm:$0xff]  ;;  %v400_v26 = vld [vmem:[#allocation7 + $0x10] sm:$0xff]  ;;  %s1062_s17 = scalar_lea.hbm %s1476_s6, 128  ;;  %p1063_p10 = scmp.lt.s32.totalorder %s1057_s11, %s1476_s6 }
  0x40   : > { %422 = vmatpush.msra.mxu0 %v409_v8  ;;  %787 = vmatpush.msra.mxu2 %v409_v8  ;;  %v444_v25 = vld [vmem:[#allocation8 + $0x18] sm:$0xff]  ;;  %v443_v27 = vld [vmem:[#allocation8 + $0x10] sm:$0xff]  ;;  %v399_v30 = vld [vmem:[#allocation7 + $0x8] sm:$0xff] }
  0x41   : > { %465 = vmatpush.msra.mxu1 %v452_v9  ;;  %803 = vmatpush.msra.mxu3 %v452_v9  ;;  %v392_v28 = vld [vmem:[%s1347_s8] sm:$0xff]  ;;  %v442_v31 = vld [vmem:[#allocation8 + $0x8] sm:$0xff]  ;;  %v395_v33 = vld [vmem:[#allocation5 + $0x8] sm:$0xff] }
  0x42   : > { %423 = vmatpush.msra.mxu0 %v408_v10  ;;  %788 = vmatpush.msra.mxu2 %v408_v10  ;;  %v394_v29 = vld [vmem:[#allocation5] sm:$0xff]  ;;  %v393_v32 = vld [vmem:[%s1347_s8 + $0x8] sm:$0xff]  ;;  %v398_v34 = vld [vmem:[#allocation7] sm:$0xff] }
  0x43   : > { %466 = vmatpush.msra.mxu1 %v451_v11  ;;  %804 = vmatpush.msra.mxu3 %v451_v11  ;;  %v441_v35 = vld [vmem:[#allocation8] sm:$0xff]  ;;  %v396_v36 = vadd.f32 %v394_v29, %v392_v28  ;;  %v397_v37 = vadd.f32 %v395_v33, %v393_v32  ;;  %v920_v38 = vld [vmem:[%s1473_s3] ss:$0 sm:$0xff] }
  0x44   : > { %424 = vmatpush.msra.mxu0 %v407_v12  ;;  %789 = vmatpush.msra.mxu2 %v407_v12  ;;  %v921_v39 = vld [vmem:[%s1475_s5] ss:$0 sm:$0xff] }
  0x45   : > { %467 = vmatpush.msra.mxu1 %v450_v13  ;;  %805 = vmatpush.msra.mxu3 %v450_v13 }
  0x46   : > { %425 = vmatpush.msra.mxu0 %v406_v14  ;;  %790 = vmatpush.msra.mxu2 %v406_v14 }
  0x47   : > { %468 = vmatpush.msra.mxu1 %v449_v15  ;;  %806 = vmatpush.msra.mxu3 %v449_v15 }
  0x48   : > { %426 = vmatpush.msra.mxu0 %v405_v16  ;;  %791 = vmatpush.msra.mxu2 %v405_v16 }
  0x49   : > { %469 = vmatpush.msra.mxu1 %v448_v17  ;;  %807 = vmatpush.msra.mxu3 %v448_v17 }
  0x4a   : > { %427 = vmatpush.msra.mxu0 %v404_v18  ;;  %792 = vmatpush.msra.mxu2 %v404_v18 }
  0x4b   : > { %470 = vmatpush.msra.mxu1 %v447_v19  ;;  %808 = vmatpush.msra.mxu3 %v447_v19 }
  0x4c   : > { %428 = vmatpush.msra.mxu0 %v403_v20  ;;  %793 = vmatpush.msra.mxu2 %v403_v20 }
  0x4d   : > { %471 = vmatpush.msra.mxu1 %v446_v21  ;;  %809 = vmatpush.msra.mxu3 %v446_v21 }
  0x4e   : > { %429 = vmatpush.msra.mxu0 %v402_v22  ;;  %794 = vmatpush.msra.mxu2 %v402_v22 }
  0x4f   : > { %472 = vmatpush.msra.mxu1 %v445_v23  ;;  %810 = vmatpush.msra.mxu3 %v445_v23 }
  0x50   : > { %430 = vmatpush.msra.mxu0 %v401_v24  ;;  %795 = vmatpush.msra.mxu2 %v401_v24 }
  0x51   : > { %473 = vmatpush.msra.mxu1 %v444_v25  ;;  %811 = vmatpush.msra.mxu3 %v444_v25 }
  0x52   : > { %431 = vmatpush.msra.mxu0 %v400_v26  ;;  %796 = vmatpush.msra.mxu2 %v400_v26 }
  0x53   : > { %474 = vmatpush.msra.mxu1 %v443_v27  ;;  %812 = vmatpush.msra.mxu3 %v443_v27 }
  0x54   : > { %432 = vmatpush.msra.mxu0 %v399_v30  ;;  %797 = vmatpush.msra.mxu2 %v399_v30 }
  0x55   : > { %475 = vmatpush.msra.mxu1 %v442_v31  ;;  %813 = vmatpush.msra.mxu3 %v442_v31 }
  0x56   : > { %433 = vmatpush.msra.mxu0 %v398_v34  ;;  %798 = vmatpush.msra.mxu2 %v398_v34 }
  0x57   : > { %476 = vmatpush.msra.mxu1 %v441_v35  ;;  %434 = vmatmul.f32.vlgmr.msra.gmra.mxu0 %v396_v36 }
  0x58   : > { %477 = vmatmul.f32.vlgmr.msra.gmra.mxu1 %v396_v36  ;;  %814 = vmatpush.msra.mxu3 %v441_v35 }
  0x59   : > { %480 = vmatmul.f32.vlgmr.msra.gmra.mxu3 %v397_v37  ;;  %437 = vmatmul.f32.vlgmr.msra.gmra.mxu2 %v397_v37 }
  0xd4   : > { %v435_v40 = vpop.f32.mrf.mxu0 }
  0xd5   : > { %v478_v41 = vpop.f32.mrf.mxu1  ;;  %v436_v42 = vadd.f32 %v920_v38, %v435_v40 }
  0xd6   : > { %v479_v43 = vadd.f32 %v921_v39, %v478_v41 }
  0xd7   : > { %485 = vst.msk [vmem:[%s1370_s16] sm:$0xff] %vm484_vm0, %v436_v42  ;;  %511 = vrot.lane.b32.xlu2 %v436_v42, %s1172_s22  ;;  %491 = vrot.lane.b32.xlu0 %v436_v42, %s1171_s15 }
  0xd8   : > { %502 = vrot.lane.b32.xlu1 %v479_v43, %s1171_s15  ;;  %487 = vst.msk [vmem:[%s1374_s1] sm:$0xff] %vm484_vm0, %v479_v43 }
  0xdc   : > { %v481_v44 = vpop.f32.mrf.mxu3  ;;  %v438_v45 = vpop.f32.mrf.mxu2 }
  0xdd   : > { %v482_v46 = vadd.f32 %v921_v39, %v481_v44  ;;  %v439_v47 = vadd.f32 %v920_v38, %v438_v45 }
  0xdf   : > { %488 = vst.msk [vmem:[%s1374_s1 + $0x8] sm:$0xff] %vm484_vm0, %v482_v46  ;;  %529 = vrot.lane.b32.xlu2 %v436_v42, %s1173_s13  ;;  %520 = vrot.lane.b32.xlu0 %v479_v43, %s1172_s22 }
  0xe0   : > { %504 = vrot.lane.b32.xlu1 %v482_v46, %s1171_s15  ;;  %486 = vst.msk [vmem:[%s1370_s16 + $0x8] sm:$0xff] %vm484_vm0, %v439_v47 }
  0xe7   : > { %513 = vrot.lane.b32.xlu2 %v439_v47, %s1172_s22  ;;  %493 = vrot.lane.b32.xlu0 %v439_v47, %s1171_s15  ;;  %s1058_s15 = scalar_lea.hbm %s1057_s11, 64 }
  0xe8   : > { %522 = vrot.lane.b32.xlu1 %v482_v46, %s1172_s22  ;;  %p1059_p1 = scmp.ne.s32.totalorder %s1057_s11, %s1058_s15  ;;  %p1064_p12 = scmp.lt.s32.totalorder %s1062_s17, %s1058_s15 }
  0xea   : > { %p1060_p4 = pnand %p1059_p1, %p1320_p5  ;;  %p1065_p13 = por %p1064_p12, %p1063_p10 }
  0xec   : > { %p1061_p8 = pneg %p1060_p4 }
  0xee   : > { %p1066_p0 = pnand %p1065_p13, %p1061_p8 }
  0xef   : > { %540 = vrot.lane.b32.xlu2 %v482_v46, %s1173_s13  ;;  %531 = vrot.lane.b32.xlu0 %v439_v47, %s1173_s13 }
  0xf0   : > { %538 = vrot.lane.b32.xlu1 %v479_v43, %s1173_s13 }
 0x131   : > { %v512_v48 = vpop.permute.xlu2 %511 }
 0x132   : > { %764 = vst.msk [vmem:[%s1370_s16 + $0x20] sm:$0xff] %vm484_vm0, %v512_v48 }
 0x139   : > { %v530_v49 = vpop.permute.xlu2 %529 }
 0x13a   : > { %768 = vst.msk [vmem:[%s1370_s16 + $0x30] sm:$0xff] %vm484_vm0, %v530_v49 }
 0x141   : > { %v514_v50 = vpop.permute.xlu2 %513 }
 0x142   : > { %765 = vst.msk [vmem:[%s1370_s16 + $0x28] sm:$0xff] %vm484_vm0, %v514_v50 }
 0x149   : > { %v541_v52 = vpop.permute.xlu2 %540  ;;  %v492_v53 = vpop.permute.xlu0 %491 }
 0x14a   : > { %v503_v51 = vpop.permute.xlu1 %502  ;;  %771 = vst.msk [vmem:[%s1374_s1 + $0x38] sm:$0xff] %vm484_vm0, %v541_v52 }
 0x14b   : > { %762 = vst.msk [vmem:[%s1374_s1 + $0x10] sm:$0xff] %vm484_vm0, %v503_v51 }
 0x14c   : > { %760 = vst.msk [vmem:[%s1370_s16 + $0x10] sm:$0xff] %vm484_vm0, %v492_v53 }
 0x151   : > { %v521_v55 = vpop.permute.xlu0 %520 }
 0x152   : > { %v505_v54 = vpop.permute.xlu1 %504  ;;  %766 = vst.msk [vmem:[%s1374_s1 + $0x20] sm:$0xff] %vm484_vm0, %v521_v55 }
 0x153   : > { %763 = vst.msk [vmem:[%s1374_s1 + $0x18] sm:$0xff] %vm484_vm0, %v505_v54 }
 0x159   : > { %v494_v57 = vpop.permute.xlu0 %493 }
 0x15a   : > { %v523_v56 = vpop.permute.xlu1 %522  ;;  %761 = vst.msk [vmem:[%s1370_s16 + $0x18] sm:$0xff] %vm484_vm0, %v494_v57 }
 0x15b   : > { %767 = vst.msk [vmem:[%s1374_s1 + $0x28] sm:$0xff] %vm484_vm0, %v523_v56 }
 0x161   : > { %v532_v59 = vpop.permute.xlu0 %531 }
 0x162   : > { %v539_v58 = vpop.permute.xlu1 %538  ;;  %769 = vst.msk [vmem:[%s1370_s16 + $0x38] sm:$0xff] %vm484_vm0, %v532_v59 }
 0x163   : > { %770 = vst.msk [vmem:[%s1374_s1 + $0x30] sm:$0xff] %vm484_vm0, %v539_v58 }
 0x164   : > { %1069 = shalt.err (!%p1066_p0)
}
 0x165   : > { %s1174_s16 = smov 128   ;;  %s1175_s21 = smov 8  }
 0x166   : > { %829 = dma.vmem_to_hbm [thread:$0]  (%p1320_p5), %s1410_s30, 1024, %s570_s4, %s548_s9, %s1174_s16, %s1174_s16, %s1175_s21  }
 0x167   : > { %s553_s10 = scalar_lea.sflag [#allocation12], %s1343_s18  ;;  %s1084_s23 = sshra.s32 %s1417_s29, 4  ;;  %s1085_s23 = int_to_ptr.hbm [resolvable:$true] %s1084_s23 }
 0x168   : > { %s1086_s8 = scalar_lea.hbm %s1085_s23, 64  ;;  %s1090_s15 = scalar_lea.hbm %s1477_s7, 128 }
 0x169   : > { %p1087_p3 = scmp.ne.s32.totalorder %s1085_s23, %s1086_s8  ;;  %p1091_p2 = scmp.lt.s32.totalorder %s1085_s23, %s1477_s7 }
 0x16a   : > { %p1092_p1 = scmp.lt.s32.totalorder %s1090_s15, %s1086_s8 }
 0x16b   : > { %p1088_p7 = pnand %p1087_p3, %p1320_p5 }
 0x16c   : > { %p1093_p4 = por %p1092_p1, %p1091_p2 }
 0x16d   : > { %p1089_p9 = pneg %p1088_p7 }
 0x16f   : > { %p1094_p8 = pnand %p1093_p4, %p1089_p9 }
 0x171   : > { %1097 = shalt.err (!%p1094_p8)
}
 0x172   : > { %830 = dma.vmem_to_hbm [thread:$0]  (%p1320_p5), %s1415_s27, 1024, %s1417_s29, %s553_s10, %s1174_s16, %s1174_s16, %s1175_s21  }
 0x173 PF: > { %s1501_s18 = sld [smem:[#allocation18_spill]]  ;;  %s603_s30 = sand.u32 1, %s1144_s24  }
 0x174   : > { %p848_p10 = pnand %p749_p11, %p1265_p6  ;;  %s604_s4 = scalar_lea.sflag [#allocation4], %s603_s30 }
 0x176   : > { %p849_p12 = pneg %p848_p10 }
 0x178   : > { %1135 = dma.done.wait (%p849_p12), %s604_s4, 1024  }
 0x179   : > { %1137 = vsyncadd (%p849_p12), %s604_s4, 4294966272  ;;  %s614_s9 = scalar_lea.sflag [#allocation12], %s603_s30 }
 0x17a   : > { %1139 = dma.done.wait (%p849_p12), %s614_s9, 1024  }
 0x17b   : > { %1141 = vsyncadd (%p849_p12), %s614_s9, 4294966272  ;;  %s29_s29 = sadd.s32 1, %s1501_s18   ;;  %s1502_s19 = sld [smem:[#allocation19_spill]] }
 0x17c   : > { %p26_p13 = scmp.ge.s32.totalorder %s29_s29, 4   ;;  %s1503_s24 = smov %s1148_s25 }
 0x17d   : > { %s1504_s25 = smov %s1152_s26  ;;  %s1505_s26 = smov %s1329_s14 }
 0x17e   : > { %s1506_s27 = smov %s1160_s28  ;;  %28 = sbr.rel (!%p26_p13) target bundleno = 14 (0xe), region = 125 }
 0x181   : > { %s1507_s28 = smov %s1502_s19 }
 0x183   :  { %620 = vsyncpa [#allocation3], 1 }
 0x184   :  { %622 = vsyncpa [#allocation3 + $0x1], 1 }
 0x185   :  { %623 = vsyncpa [#allocation6], 1 }
 0x186   :  { %624 = vsyncpa [#allocation9], 1 }
 0x187   :  { %625 = vsyncpa [#allocation4], 1 }
 0x188   :  { %627 = vsyncpa [#allocation4 + $0x1], 1 }
 0x189   :  { %628 = vsyncpa [#allocation12], 1 }
 0x18a   :  { %630 = vsyncpa [#allocation12 + $0x1], 1 }

</bundles_post_ra>
